<compile_context>
chip_gen: v6e
topology: v6e:2x2x1
jax: 0.10.0
libtpu: 0.0.40
codegen_flags: <defaults>
</compile_context>

<pallas_src>
import functools

import jax
import jax.numpy as jnp
from jax import lax
from jax.experimental import pallas as pl
from jax.experimental.pallas import tpu as pltpu

C_PAD = 128  # classifier width padded to one full lane group


def rnn_classify_kernel(tok_ref, emb_ref, wih_t_ref, whh_t_ref,
                        wcls_t_ref, bcls_ref, out_ref):
    # tok_ref:    (B, S)     int32 token ids
    # emb_ref:    (V, D)     embedding.weight
    # wih_t_ref:  (D, H)     rnn.weight_ih_l0^T
    # whh_t_ref:  (H, H)     rnn.weight_hh_l0^T
    # wcls_t_ref: (H, C_PAD) classify.weight^T, zero-padded lanes >= C
    # bcls_ref:   (1, C_PAD) classify.bias, -1e30 in padded lanes
    # out_ref:    (B, C_PAD) softmax probabilities (padded lanes == 0)
    B, S = tok_ref.shape
    V = emb_ref.shape[0]

    # Fused input projection: (V, D) @ (D, H) -> (V, H); done once, in VMEM.
    proj = jnp.dot(emb_ref[...], wih_t_ref[...],
                   preferred_element_type=jnp.float32)

    tok = tok_ref[...]                                      # (B, S) int32
    lane_ids = lax.broadcasted_iota(jnp.int32, (B, V), 1)   # (B, V)
    whh = whh_t_ref[...]                                    # hoisted, reused

    def x_at(t):
        # One-hot MXU gather of the already-projected embedding rows.
        onehot = (lane_ids == tok[:, t:t + 1]).astype(jnp.float32)     # (B, V)
        return jnp.dot(onehot, proj, preferred_element_type=jnp.float32)  # (B, H)

    # h_0 = 0  =>  first step is just tanh of the projected input.
    h = jnp.tanh(x_at(0))

    # Fully unrolled recurrence (S small & static): only the HxH matmul sits
    # on the sequential dependency chain; the x_at(t) gathers are independent
    # and schedule ahead of it.
    for t in range(1, S):
        h = jnp.tanh(x_at(t) + jnp.dot(h, whh, preferred_element_type=jnp.float32))

    # Lane-dense classify: (B, H) @ (H, C_PAD) + (1, C_PAD)
    logits = (jnp.dot(h, wcls_t_ref[...], preferred_element_type=jnp.float32)
              + bcls_ref[...])

    # Numerically stable softmax; padded lanes have bias=-1e30 -> exp == 0,
    # so they contribute nothing to the sum and store 0.
    m = jnp.max(logits, axis=1, keepdims=True)
    e = jnp.exp(logits - m)
    s = jnp.sum(e, axis=1, keepdims=True)
    r = pl.reciprocal(s, approx=True)   # EUP vrcp fast path
    r = r * (2.0 - s * r)               # one Newton step -> ~1e-7 rel error
    out_ref[...] = e * r


def prepare_params(emb_table, w_ih, w_hh, w_cls, b_cls, c_pad=C_PAD):
    """One-time parameter preparation (transposes / padding / casts)."""
    H = w_hh.shape[0]
    C = w_cls.shape[0]
    wcls_t_pad = jnp.zeros((H, c_pad), jnp.float32)
    wcls_t_pad = wcls_t_pad.at[:, :C].set(jnp.transpose(w_cls).astype(jnp.float32))
    bcls_pad = jnp.full((1, c_pad), -1e30, jnp.float32)
    bcls_pad = bcls_pad.at[0, :C].set(b_cls.astype(jnp.float32))
    params = (
        emb_table.astype(jnp.float32),                  # (V, D)
        jnp.transpose(w_ih).astype(jnp.float32),        # (D, H)
        jnp.transpose(w_hh).astype(jnp.float32),        # (H, H)
        wcls_t_pad,                                     # (H, C_PAD)
        bcls_pad,                                       # (1, C_PAD)
    )
    return params, C


@functools.partial(jax.jit, static_argnames=("num_classes",))
def torch_model_forward(x_tokens, emb, wih_t, whh_t, wcls_t, bcls, *, num_classes):
    """Forward equivalent to TorchModel.forward(x) (y=None branch).

    x_tokens: (B, S) int32 token ids
    returns:  (B, num_classes) softmax probabilities
    """
    B, _ = x_tokens.shape
    vmem = pl.BlockSpec(memory_space=pltpu.MemorySpace.VMEM)

    out_padded = pl.pallas_call(
        rnn_classify_kernel,
        out_shape=jax.ShapeDtypeStruct((B, wcls_t.shape[1]), jnp.float32),
        in_specs=[vmem] * 6,
        out_specs=vmem,
    )(x_tokens.astype(jnp.int32), emb, wih_t, whh_t, wcls_t, bcls)

    return out_padded[:, :num_classes]


def reference_forward(x_tokens, emb_table, w_ih, w_hh, w_cls, b_cls):
    """Pure-JAX reference mirroring the PyTorch semantics."""
    x = emb_table[x_tokens]                         # (B, S, D)
    B, S, _ = x.shape
    H = w_hh.shape[0]
    h = jnp.zeros((B, H), jnp.float32)
    for t in range(S):
        h = jnp.tanh(x[:, t, :] @ w_ih.T + h @ w_hh.T)
    logits = h @ w_cls.T + b_cls
    return jax.nn.softmax(logits, axis=1)


if __name__ == "__main__":
    # Small shapes consistent with the module's forward.
    B, S = 8, 6          # batch, sequence length
    V, D = 30, 16        # vocab size, vector_dim
    H, C = 32, 6         # hidden_size, num classes (Linear(hidden_size, 6))

    key = jax.random.PRNGKey(0)
    k_emb, k_ih, k_hh, k_w, k_b, k_x = jax.random.split(key, 6)

    emb_table = jax.random.normal(k_emb, (V, D), jnp.float32) * 0.1
    w_ih = jax.random.normal(k_ih, (H, D), jnp.float32) * 0.1   # rnn.weight_ih_l0
    w_hh = jax.random.normal(k_hh, (H, H), jnp.float32) * 0.1   # rnn.weight_hh_l0
    w_cls = jax.random.normal(k_w, (C, H), jnp.float32) * 0.1   # classify.weight
    b_cls = jax.random.normal(k_b, (C,), jnp.float32) * 0.1     # classify.bias

    x_tokens = jax.random.randint(k_x, (B, S), 0, V, jnp.int32)

    params, num_classes = prepare_params(emb_table, w_ih, w_hh, w_cls, b_cls)
    params = jax.block_until_ready(params)   # one-time prep, outside the hot path

    y_pred = torch_model_forward(x_tokens, *params, num_classes=num_classes)
    y_pred = jax.block_until_ready(y_pred)

    y_ref = reference_forward(x_tokens, emb_table, w_ih, w_hh, w_cls, b_cls)
    assert y_pred.shape == (B, C)
    assert jnp.allclose(y_pred, y_ref, atol=1e-5, rtol=1e-5)
    assert jnp.allclose(jnp.sum(y_pred, axis=1), jnp.ones((B,)), atol=1e-5)

    print("KERNEL_OK")
</pallas_src>

<mosaic_0001>
module attributes {stable_mosaic.version = 11 : i64} {
  func.func @rnn_classify_kernel(%arg0: memref<8x6xi32, #tpu.memory_space<vmem>>, %arg1: memref<30x16xf32, #tpu.memory_space<vmem>>, %arg2: memref<16x32xf32, #tpu.memory_space<vmem>>, %arg3: memref<32x32xf32, #tpu.memory_space<vmem>>, %arg4: memref<32x128xf32, #tpu.memory_space<vmem>>, %arg5: memref<1x128xf32, #tpu.memory_space<vmem>>, %arg6: memref<8x128xf32, #tpu.memory_space<vmem>>) attributes {dimension_semantics = [], scalar_prefetch = 0 : i64, scratch_operands = 0 : i64, tpu.core_type = #tpu.core_type<tc>} {
    %c0 = arith.constant 0 : index
    %c0_0 = arith.constant 0 : index
    %0 = vector.load %arg1[%c0, %c0_0] : memref<30x16xf32, #tpu.memory_space<vmem>>, vector<30x16xf32>
    %c0_1 = arith.constant 0 : index
    %c0_2 = arith.constant 0 : index
    %1 = vector.load %arg2[%c0_1, %c0_2] : memref<16x32xf32, #tpu.memory_space<vmem>>, vector<16x32xf32>
    %cst = arith.constant dense<0.000000e+00> : vector<30x32xf32>
    %2 = tpu.matmul %0, %1, %cst {dimension_numbers = #tpu.dot_dimension_numbers<[1], [0], [0], [1], [0, 0, 1, 1], [], []>} : vector<30x16xf32>, vector<16x32xf32>, vector<30x32xf32> -> vector<30x32xf32>
    %c0_3 = arith.constant 0 : index
    %c0_4 = arith.constant 0 : index
    %3 = vector.load %arg0[%c0_3, %c0_4] : memref<8x6xi32, #tpu.memory_space<vmem>>, vector<8x6xi32>
    %4 = tpu.iota {dimensions = array<i32: 1>} : vector<8x30xi32>
    %c0_5 = arith.constant 0 : index
    %c0_6 = arith.constant 0 : index
    %5 = vector.load %arg3[%c0_5, %c0_6] : memref<32x32xf32, #tpu.memory_space<vmem>>, vector<32x32xf32>
    %6 = vector.extract_strided_slice %3 {offsets = [0, 0], sizes = [8, 1], strides = [1, 1]} : vector<8x6xi32> to vector<8x1xi32>
    %7 = vector.broadcast %6 : vector<8x1xi32> to vector<8x30xi32>
    %8 = arith.cmpi eq, %4, %7 : vector<8x30xi32>
    %9 = arith.extui %8 : vector<8x30xi1> to vector<8x30xi32>
    %10 = arith.sitofp %9 : vector<8x30xi32> to vector<8x30xf32>
    %cst_7 = arith.constant dense<0.000000e+00> : vector<8x32xf32>
    %11 = tpu.matmul %10, %2, %cst_7 {dimension_numbers = #tpu.dot_dimension_numbers<[1], [0], [0], [1], [0, 0, 1, 1], [], []>} : vector<8x30xf32>, vector<30x32xf32>, vector<8x32xf32> -> vector<8x32xf32>
    %12 = math.tanh %11 : vector<8x32xf32>
    %13 = vector.extract_strided_slice %3 {offsets = [0, 1], sizes = [8, 1], strides = [1, 1]} : vector<8x6xi32> to vector<8x1xi32>
    %14 = vector.broadcast %13 : vector<8x1xi32> to vector<8x30xi32>
    %15 = arith.cmpi eq, %4, %14 : vector<8x30xi32>
    %16 = arith.extui %15 : vector<8x30xi1> to vector<8x30xi32>
    %17 = arith.sitofp %16 : vector<8x30xi32> to vector<8x30xf32>
    %cst_8 = arith.constant dense<0.000000e+00> : vector<8x32xf32>
    %18 = tpu.matmul %17, %2, %cst_8 {dimension_numbers = #tpu.dot_dimension_numbers<[1], [0], [0], [1], [0, 0, 1, 1], [], []>} : vector<8x30xf32>, vector<30x32xf32>, vector<8x32xf32> -> vector<8x32xf32>
    %cst_9 = arith.constant dense<0.000000e+00> : vector<8x32xf32>
    %19 = tpu.matmul %12, %5, %cst_9 {dimension_numbers = #tpu.dot_dimension_numbers<[1], [0], [0], [1], [0, 0, 1, 1], [], []>} : vector<8x32xf32>, vector<32x32xf32>, vector<8x32xf32> -> vector<8x32xf32>
    %20 = arith.addf %18, %19 : vector<8x32xf32>
    %21 = math.tanh %20 : vector<8x32xf32>
    %22 = vector.extract_strided_slice %3 {offsets = [0, 2], sizes = [8, 1], strides = [1, 1]} : vector<8x6xi32> to vector<8x1xi32>
    %23 = vector.broadcast %22 : vector<8x1xi32> to vector<8x30xi32>
    %24 = arith.cmpi eq, %4, %23 : vector<8x30xi32>
    %25 = arith.extui %24 : vector<8x30xi1> to vector<8x30xi32>
    %26 = arith.sitofp %25 : vector<8x30xi32> to vector<8x30xf32>
    %cst_10 = arith.constant dense<0.000000e+00> : vector<8x32xf32>
    %27 = tpu.matmul %26, %2, %cst_10 {dimension_numbers = #tpu.dot_dimension_numbers<[1], [0], [0], [1], [0, 0, 1, 1], [], []>} : vector<8x30xf32>, vector<30x32xf32>, vector<8x32xf32> -> vector<8x32xf32>
    %cst_11 = arith.constant dense<0.000000e+00> : vector<8x32xf32>
    %28 = tpu.matmul %21, %5, %cst_11 {dimension_numbers = #tpu.dot_dimension_numbers<[1], [0], [0], [1], [0, 0, 1, 1], [], []>} : vector<8x32xf32>, vector<32x32xf32>, vector<8x32xf32> -> vector<8x32xf32>
    %29 = arith.addf %27, %28 : vector<8x32xf32>
    %30 = math.tanh %29 : vector<8x32xf32>
    %31 = vector.extract_strided_slice %3 {offsets = [0, 3], sizes = [8, 1], strides = [1, 1]} : vector<8x6xi32> to vector<8x1xi32>
    %32 = vector.broadcast %31 : vector<8x1xi32> to vector<8x30xi32>
    %33 = arith.cmpi eq, %4, %32 : vector<8x30xi32>
    %34 = arith.extui %33 : vector<8x30xi1> to vector<8x30xi32>
    %35 = arith.sitofp %34 : vector<8x30xi32> to vector<8x30xf32>
    %cst_12 = arith.constant dense<0.000000e+00> : vector<8x32xf32>
    %36 = tpu.matmul %35, %2, %cst_12 {dimension_numbers = #tpu.dot_dimension_numbers<[1], [0], [0], [1], [0, 0, 1, 1], [], []>} : vector<8x30xf32>, vector<30x32xf32>, vector<8x32xf32> -> vector<8x32xf32>
    %cst_13 = arith.constant dense<0.000000e+00> : vector<8x32xf32>
    %37 = tpu.matmul %30, %5, %cst_13 {dimension_numbers = #tpu.dot_dimension_numbers<[1], [0], [0], [1], [0, 0, 1, 1], [], []>} : vector<8x32xf32>, vector<32x32xf32>, vector<8x32xf32> -> vector<8x32xf32>
    %38 = arith.addf %36, %37 : vector<8x32xf32>
    %39 = math.tanh %38 : vector<8x32xf32>
    %40 = vector.extract_strided_slice %3 {offsets = [0, 4], sizes = [8, 1], strides = [1, 1]} : vector<8x6xi32> to vector<8x1xi32>
    %41 = vector.broadcast %40 : vector<8x1xi32> to vector<8x30xi32>
    %42 = arith.cmpi eq, %4, %41 : vector<8x30xi32>
    %43 = arith.extui %42 : vector<8x30xi1> to vector<8x30xi32>
    %44 = arith.sitofp %43 : vector<8x30xi32> to vector<8x30xf32>
    %cst_14 = arith.constant dense<0.000000e+00> : vector<8x32xf32>
    %45 = tpu.matmul %44, %2, %cst_14 {dimension_numbers = #tpu.dot_dimension_numbers<[1], [0], [0], [1], [0, 0, 1, 1], [], []>} : vector<8x30xf32>, vector<30x32xf32>, vector<8x32xf32> -> vector<8x32xf32>
    %cst_15 = arith.constant dense<0.000000e+00> : vector<8x32xf32>
    %46 = tpu.matmul %39, %5, %cst_15 {dimension_numbers = #tpu.dot_dimension_numbers<[1], [0], [0], [1], [0, 0, 1, 1], [], []>} : vector<8x32xf32>, vector<32x32xf32>, vector<8x32xf32> -> vector<8x32xf32>
    %47 = arith.addf %45, %46 : vector<8x32xf32>
    %48 = math.tanh %47 : vector<8x32xf32>
    %49 = vector.extract_strided_slice %3 {offsets = [0, 5], sizes = [8, 1], strides = [1, 1]} : vector<8x6xi32> to vector<8x1xi32>
    %50 = vector.broadcast %49 : vector<8x1xi32> to vector<8x30xi32>
    %51 = arith.cmpi eq, %4, %50 : vector<8x30xi32>
    %52 = arith.extui %51 : vector<8x30xi1> to vector<8x30xi32>
    %53 = arith.sitofp %52 : vector<8x30xi32> to vector<8x30xf32>
    %cst_16 = arith.constant dense<0.000000e+00> : vector<8x32xf32>
    %54 = tpu.matmul %53, %2, %cst_16 {dimension_numbers = #tpu.dot_dimension_numbers<[1], [0], [0], [1], [0, 0, 1, 1], [], []>} : vector<8x30xf32>, vector<30x32xf32>, vector<8x32xf32> -> vector<8x32xf32>
    %cst_17 = arith.constant dense<0.000000e+00> : vector<8x32xf32>
    %55 = tpu.matmul %48, %5, %cst_17 {dimension_numbers = #tpu.dot_dimension_numbers<[1], [0], [0], [1], [0, 0, 1, 1], [], []>} : vector<8x32xf32>, vector<32x32xf32>, vector<8x32xf32> -> vector<8x32xf32>
    %56 = arith.addf %54, %55 : vector<8x32xf32>
    %57 = math.tanh %56 : vector<8x32xf32>
    %c0_18 = arith.constant 0 : index
    %c0_19 = arith.constant 0 : index
    %58 = vector.load %arg4[%c0_18, %c0_19] : memref<32x128xf32, #tpu.memory_space<vmem>>, vector<32x128xf32>
    %cst_20 = arith.constant dense<0.000000e+00> : vector<8x128xf32>
    %59 = tpu.matmul %57, %58, %cst_20 {dimension_numbers = #tpu.dot_dimension_numbers<[1], [0], [0], [1], [0, 0, 1, 1], [], []>} : vector<8x32xf32>, vector<32x128xf32>, vector<8x128xf32> -> vector<8x128xf32>
    %c0_21 = arith.constant 0 : index
    %c0_22 = arith.constant 0 : index
    %60 = vector.load %arg5[%c0_21, %c0_22] : memref<1x128xf32, #tpu.memory_space<vmem>>, vector<1x128xf32>
    %61 = vector.broadcast %60 : vector<1x128xf32> to vector<8x128xf32>
    %62 = arith.addf %59, %61 : vector<8x128xf32>
    %cst_23 = arith.constant dense<0xFF800000> : vector<8xf32>
    %63 = vector.multi_reduction <maximumf>, %62, %cst_23 [1] : vector<8x128xf32> to vector<8xf32>
    %64 = vector.shape_cast %63 : vector<8xf32> to vector<8x1xf32>
    %65 = vector.broadcast %64 : vector<8x1xf32> to vector<8x128xf32>
    %66 = arith.subf %62, %65 : vector<8x128xf32>
    %67 = math.exp %66 : vector<8x128xf32>
    %cst_24 = arith.constant dense<0.000000e+00> : vector<8xf32>
    %68 = vector.multi_reduction <add>, %67, %cst_24 [1] : vector<8x128xf32> to vector<8xf32>
    %69 = vector.shape_cast %68 : vector<8xf32> to vector<8x1xf32>
    %70 = tpu.reciprocal %69 {approx = true} : vector<8x1xf32> -> vector<8x1xf32>
    %71 = arith.mulf %69, %70 : vector<8x1xf32>
    %cst_25 = arith.constant 2.000000e+00 : f32
    %72 = vector.broadcast %cst_25 : f32 to vector<8x1xf32>
    %73 = arith.subf %72, %71 : vector<8x1xf32>
    %74 = arith.mulf %70, %73 : vector<8x1xf32>
    %75 = vector.broadcast %74 : vector<8x1xf32> to vector<8x128xf32>
    %76 = arith.mulf %67, %75 : vector<8x128xf32>
    %c0_26 = arith.constant 0 : index
    %c0_27 = arith.constant 0 : index
    %77 = vector.load %arg6[%c0_26, %c0_27] : memref<8x128xf32, #tpu.memory_space<vmem>>, vector<8x128xf32>
    tpu.vector_store %arg6[%c0_26, %c0_27], %76 {strides = array<i32>} : memref<8x128xf32, #tpu.memory_space<vmem>>, vector<8x128xf32>,
    return
  }
}

</mosaic_0001>

<bundles_post_ra>
// kernel: torch_model_forward.1
= control target key start
LH: loop header
LB: loop body
LE: loop exit
PB: predicated region body
PF: predicated region fallthrough
CT: control target
= control target key end

     0   :  { %11 = vsyncpa [#allocation3], 0  ;;  %s1729_s0 = inlined_call_operand.hbm [shape: s32[8,6], index: 0, kind: input, shape index: {}]   ;;  %s1730_s1 = inlined_call_operand.vmem [shape: f32[30,16], index: 1, kind: input, shape index: {}]   ;;  %s1731_s2 = inlined_call_operand.vmem [shape: f32[16,32], index: 2, kind: input, shape index: {}]   ;;  %s1732_s3 = inlined_call_operand.vmem [shape: f32[32,32], index: 3, kind: input, shape index: {}]   ;;  %s1733_s4 = inlined_call_operand.hbm [shape: f32[32,128], index: 4, kind: input, shape index: {}]   ;;  %s1734_s5 = inlined_call_operand.vmem [shape: f32[1,128], index: 5, kind: input, shape index: {}]   ;;  %s1735_s6 = inlined_call_operand.hbm [shape: f32[8,128], index: 6, kind: output, shape index: {}]  }
   0x1   :  { %12 = vsyncpa [#allocation6], 0 }
   0x2   :  { %13 = vsyncpa [#allocation4], 0  ;;  %s1463_s21 = smov [#allocation2]   ;;  %s1464_s23 = smov [#allocation5]  }
   0x3   :  { %s20_s22 = sshll.u32 %s1463_s21, 4  ;;  %s35_s24 = sshll.u32 %s1464_s23, 4  ;;  %s21_s22 = int_to_ptr.vmem [resolvable:$true] %s20_s22  ;;  %s36_s24 = int_to_ptr.vmem [resolvable:$true] %s35_s24 }
   0x4   :  { %s1405_s25 = scalar_lea.vmem %s21_s22, 128  ;;  %p1410_p1 = scmp.lt.s32.totalorder %s21_s22, %s21_s22 }
   0x5   :  { %p1406_p0 = scmp.ne.s32.totalorder %s21_s22, %s1405_s25  ;;  %p1411_p2 = scmp.lt.s32.totalorder %s1405_s25, %s1405_s25 }
   0x7   :  { %p1412_p3 = por %p1411_p2, %p1410_p1 }
   0x9   :  { %p1413_p4 = pnand %p1412_p3, %p1406_p0 }
   0xb   :  { %1416 = shalt.err (!%p1413_p4)
}
   0xc   :  { %23 = dma.hbm_to_vmem [thread:$0]  %s1729_s0, 128, %s21_s22, [#allocation3]  }
   0xd   :  { %s1425_s28 = scalar_lea.vmem %s36_s24, 512  ;;  %p1430_p6 = scmp.lt.s32.totalorder %s36_s24, %s36_s24 }
   0xe   :  { %p1426_p5 = scmp.ne.s32.totalorder %s36_s24, %s1425_s28  ;;  %p1431_p7 = scmp.lt.s32.totalorder %s1425_s28, %s1425_s28 }
  0x10   :  { %p1432_p8 = por %p1431_p7, %p1430_p6 }
  0x12   :  { %p1433_p9 = pnand %p1432_p8, %p1426_p5 }
  0x14   :  { %1436 = shalt.err (!%p1433_p9)
}
  0x15   :  { %s1465_s29 = smov 128   ;;  %s1466_s30 = smov 8  }
  0x16   :  { %41 = dma.hbm_to_vmem [thread:$0]  %s1733_s4, 512, %s36_s24, [#allocation6], %s1465_s29, %s1465_s29, %s1466_s30  }
  0x17   :  { %1457 = dma.done.wait [#allocation3], 128  }
  0x18   :  { %1458 = vsyncadd [#allocation3], 4294967168 }
  0x19   :  { %1459 = dma.done.wait [#allocation6], 512  }
  0x1a   :  { %1460 = vsyncadd [#allocation6], 4294966784  ;;  %v1467_v0 = vmov 0   ;;  %v1468_v1 = vmov 2   ;;  %vm56_vm0 = vcmask 130048   ;;  %v55_v2 = vld [vmem:[%s1731_s2 + $0x8] sm:$0xff]  ;;  %v155_v13 = vlaneseq }
  0x1b   :  { %1375 = vset.pattern.permute.xlu0 %v1467_v0  ;;  %1377 = vset.pattern.permute.xlu1 %v1468_v1  ;;  %v54_v3 = vld [vmem:[%s1731_s2] sm:$0xff]  ;;  %v51_v5 = vld [vmem:[%s1730_s1 + $0x8] sm:$0xff]  ;;  %v52_v7 = vld [vmem:[%s1730_s1 + $0x10] sm:$0xff]  ;;  %v1469_v9 = vmov 1   ;;  %v1470_v10 = vmov 3   ;;  %v1471_v11 = vmov 4  }
  0x1c   :  { %v50_v4 = vld [vmem:[%s1730_s1] sm:$0xff]  ;;  %1220 = vmatprep.subr.mxu0 %v55_v2  ;;  %v53_v8 = vld [vmem:[%s1730_s1 + $0x18] sm:$0x3f]  ;;  %v1472_v12 = vmov 0.0   ;;  %vm1473_vm1 = vmmov 0   ;;  %vm171_vm2 = vcmask 1045504  }
  0x1d   :  { %1224 = vmatprep.mubr.msk.f32.mxu0 %vm56_vm0, %v50_v4  ;;  %1221 = vmatpush3.msra.mxu0 %v55_v2  ;;  %v1530_v6 = vld [vmem:[#allocation2] sm:$0xff]  ;;  %v1556_v16 = vand.u32 127, %v155_v13  ;;  %vm167_vm4 = vcmask 244736   ;;  %v1643_v29 = vld [vmem:[%s1732_s3 + $0x18] sm:$0xff]  ;;  %v1648_v30 = vld [vmem:[%s1732_s3 + $0x10] sm:$0xff]  ;;  %vm252_vm9 = vcmask 261120  }
  0x1e   :  { %1222 = vmatprep.subr.mxu0 %v54_v3  ;;  %162 = vperm.xlu0 %1375, %v1530_v6   ;;  %v1655_v31 = vld [vmem:[%s1732_s3 + $0x8] sm:$0xff]  ;;  %v1662_v32 = vld [vmem:[%s1732_s3] sm:$0xff]  ;;  %v1474_v51 = vmov 5   ;;  %v1014_v2 = vld [vmem:[#allocation5 + $0x10] sm:$0xff]  ;;  %s1475_s26 = smov [#allocation7]  }
  0x1f   :  { %1223 = vmatpush3.msra.mxu0 %v54_v3  ;;  %401 = vperm.xlu1 %1377, %v1530_v6   ;;  %v1015_v1 = vld [vmem:[#allocation5 + $0x18] sm:$0xff]  ;;  %v1013_v3 = vld [vmem:[#allocation5 + $0x8] sm:$0xff]  ;;  %v1012_v4 = vld [vmem:[#allocation5] sm:$0xff]  ;;  %s1115_s27 = sshll.u32 %s1475_s26, 4  ;;  %s1116_s27 = int_to_ptr.vmem [resolvable:$true] %s1115_s27 }
  0x20   :  { %1225 = vmatmul.mubr.msk.f32.vlgmr.msra.gmra.mxu0 %vm56_vm0, %v51_v5  ;;  %1230 = vmatprep.subr.mxu1 %v1472_v12  ;;  %p1442_p11 = scmp.lt.s32.totalorder %s1116_s27, %s1116_s27 }
  0x21   :  { %1227 = vmatprep.mubr.msk.f32.mxu0 %vm56_vm0, %v52_v7  ;;  %1241 = vmatprep.subr.mxu0 %v1472_v12 }
  0x22   :  { %1376 = vset.pattern.permute.xlu0 %v1469_v9  ;;  %1238 = vmatprep.mubr.msk.f32.mxu1 %vm1473_vm1, %v1472_v12  ;;  %v1152_v9 = vld [vmem:[%s1734_s5] ss:$0 sm:$0xff]  ;;  %s1437_s5 = scalar_lea.vmem %s1116_s27, 128 }
  0x23   :  { %247 = vperm.xlu0 %1376, %v1530_v6   ;;  %1378 = vset.pattern.permute.xlu1 %v1470_v10  ;;  %p1438_p10 = scmp.ne.s32.totalorder %s1116_s27, %s1437_s5  ;;  %p1443_p12 = scmp.lt.s32.totalorder %s1437_s5, %s1437_s5 }
  0x24   :  { %1228 = vmatmul.mubr.msk.f32.gmra.mxu0 %vm56_vm0, %v53_v8  ;;  %554 = vperm.xlu1 %1378, %v1530_v6  }
  0x25   :  { %1249 = vmatprep.mubr.msk.f32.mxu0 %vm1473_vm1, %v1472_v12  ;;  %1242 = vmatpush3.msra.mxu0 %v1643_v29  ;;  %p1444_p13 = por %p1443_p12, %p1442_p11 }
  0x26   :  { %1243 = vmatprep.subr.mxu0 %v1472_v12 }
  0x27   :  { %1244 = vmatpush3.msra.mxu0 %v1648_v30  ;;  %1380 = vset.pattern.permute.xlu0 %v1474_v51  ;;  %p1445_p0 = pnand %p1444_p13, %p1438_p10 }
  0x28   :  { %1379 = vset.pattern.permute.xlu1 %v1471_v11  ;;  %1245 = vmatprep.subr.mxu0 %v1472_v12 }
  0x29   :  { %707 = vperm.xlu1 %1379, %v1530_v6   ;;  %1246 = vmatpush3.msra.mxu0 %v1655_v31 }
  0x2a   :  { %1247 = vmatprep.subr.mxu0 %v1472_v12  ;;  %860 = vperm.xlu0 %1380, %v1530_v6  }
  0x2b   :  { %1248 = vmatpush3.msra.mxu0 %v1662_v32 }
  0x2c   :  { %1263 = vmatprep.subr.mxu0 %v1472_v12 }
  0x99   :  { %v163_v17 = vpop.permute.xlu0 %162 }
  0x9a   :  { %vm164_vm3 = vcmp.eq.s32.totalorder %v1556_v16, %v163_v17  ;;  %v402_v23 = vpop.permute.xlu1 %401 }
  0x9b   :  { %v1129_v20 = vsel %vm164_vm3, 1.0, %v1472_v12  ;;  %vm403_vm6 = vcmp.eq.s32.totalorder %v1556_v16, %v402_v23 }
  0x9c   :  { %v1136_v24 = vsel %vm403_vm6, 1.0, %v1472_v12 }
  0x9e   :  { %v248_v21 = vpop.permute.xlu0 %247 }
  0x9f   :  { %vm249_vm5 = vcmp.eq.s32.totalorder %v1556_v16, %v248_v21  ;;  %v555_v25 = vpop.permute.xlu1 %554 }
  0xa0   :  { %v1132_v22 = vsel %vm249_vm5, 1.0, %v1472_v12  ;;  %vm556_vm7 = vcmp.eq.s32.totalorder %v1556_v16, %v555_v25 }
  0xa1   :  { %v1140_v26 = vsel %vm556_vm7, 1.0, %v1472_v12 }
  0xa4   :  { %v708_v27 = vpop.permute.xlu1 %707 }
  0xa5   :  { %vm709_vm8 = vcmp.eq.s32.totalorder %v1556_v16, %v708_v27  ;;  %v861_v57 = vpop.permute.xlu0 %860 }
  0xa6   :  { %v1144_v28 = vsel %vm709_vm8, 1.0, %v1472_v12  ;;  %vm862_vm10 = vcmp.eq.s32.totalorder %v1556_v16, %v861_v57 }
  0xa7   :  { %v1148_v58 = vsel %vm862_vm10, 1.0, %v1472_v12 }
  0xe0   :  { %v1552_v14 = vpop.f32.mrf.mxu0 }
  0xe2   :  { %v1554_v15 = vpop.f32.mrf.mxu0 }
  0xe4   :  { %v1558_v18 = vpop.f32.mrf.mxu0 }
  0xe5   :  { %1231 = vmatpush3.msk.msra.mxu1 %vm171_vm2, %v1558_v18 }
  0xe6   :  { %v1562_v19 = vpop.f32.mrf.mxu0  ;;  %1232 = vmatprep.subr.mxu1 %v1472_v12 }
  0xe7   :  { %1233 = vmatpush3.msra.mxu1 %v1562_v19 }
  0xe8   :  { %1234 = vmatprep.subr.mxu1 %v1472_v12 }
  0xe9   :  { %1235 = vmatpush3.msra.mxu1 %v1552_v14 }
  0xea   :  { %1236 = vmatprep.subr.mxu1 %v1472_v12 }
  0xeb   :  { %1237 = vmatpush3.msra.mxu1 %v1554_v15 }
  0xec   :  { %1239 = vmatmul.mubr.msk.f32.vlgmr.msra.gmra.mxu1 %vm167_vm4, %v1129_v20  ;;  %1252 = vmatprep.subr.mxu1 %v1472_v12 }
  0xed   :  { %1253 = vmatpush3.msk.msra.mxu1 %vm171_vm2, %v1558_v18  ;;  %1260 = vmatprep.mubr.msk.f32.mxu1 %vm1473_vm1, %v1472_v12 }
  0xee   :  { %1254 = vmatprep.subr.mxu1 %v1472_v12 }
  0xef   :  { %1255 = vmatpush3.msra.mxu1 %v1562_v19 }
  0xf0   :  { %1256 = vmatprep.subr.mxu1 %v1472_v12 }
  0xf1   :  { %1257 = vmatpush3.msra.mxu1 %v1552_v14 }
  0xf2   :  { %1258 = vmatprep.subr.mxu1 %v1472_v12 }
  0xf3   :  { %1259 = vmatpush3.msra.mxu1 %v1554_v15 }
  0xf4   :  { %1274 = vmatprep.subr.mxu1 %v1472_v12  ;;  %1261 = vmatmul.mubr.msk.f32.vlgmr.msra.gmra.mxu1 %vm167_vm4, %v1132_v22 }
  0xf5   :  { %1275 = vmatpush3.msk.msra.mxu1 %vm171_vm2, %v1558_v18  ;;  %1282 = vmatprep.mubr.msk.f32.mxu1 %vm1473_vm1, %v1472_v12 }
  0xf6   :  { %1276 = vmatprep.subr.mxu1 %v1472_v12 }
  0xf7   :  { %1277 = vmatpush3.msra.mxu1 %v1562_v19 }
  0xf8   :  { %1278 = vmatprep.subr.mxu1 %v1472_v12 }
  0xf9   :  { %1279 = vmatpush3.msra.mxu1 %v1552_v14 }
  0xfa   :  { %1280 = vmatprep.subr.mxu1 %v1472_v12 }
  0xfb   :  { %1281 = vmatpush3.msra.mxu1 %v1554_v15 }
  0xfc   :  { %1296 = vmatprep.subr.mxu1 %v1472_v12  ;;  %1283 = vmatmul.mubr.msk.f32.vlgmr.msra.gmra.mxu1 %vm167_vm4, %v1136_v24 }
  0xfd   :  { %1297 = vmatpush3.msk.msra.mxu1 %vm171_vm2, %v1558_v18  ;;  %1304 = vmatprep.mubr.msk.f32.mxu1 %vm1473_vm1, %v1472_v12 }
  0xfe   :  { %1298 = vmatprep.subr.mxu1 %v1472_v12 }
  0xff   :  { %1299 = vmatpush3.msra.mxu1 %v1562_v19 }
 0x100   :  { %1300 = vmatprep.subr.mxu1 %v1472_v12 }
 0x101   :  { %1301 = vmatpush3.msra.mxu1 %v1552_v14 }
 0x102   :  { %1302 = vmatprep.subr.mxu1 %v1472_v12 }
 0x103   :  { %1303 = vmatpush3.msra.mxu1 %v1554_v15 }
 0x104   :  { %1318 = vmatprep.subr.mxu1 %v1472_v12  ;;  %1305 = vmatmul.mubr.msk.f32.vlgmr.msra.gmra.mxu1 %vm167_vm4, %v1140_v26 }
 0x105   :  { %1319 = vmatpush3.msk.msra.mxu1 %vm171_vm2, %v1558_v18  ;;  %1326 = vmatprep.mubr.msk.f32.mxu1 %vm1473_vm1, %v1472_v12 }
 0x106   :  { %1320 = vmatprep.subr.mxu1 %v1472_v12 }
 0x107   :  { %1321 = vmatpush3.msra.mxu1 %v1562_v19 }
 0x108   :  { %1322 = vmatprep.subr.mxu1 %v1472_v12 }
 0x109   :  { %1323 = vmatpush3.msra.mxu1 %v1552_v14 }
 0x10a   :  { %1324 = vmatprep.subr.mxu1 %v1472_v12 }
 0x10b   :  { %1325 = vmatpush3.msra.mxu1 %v1554_v15 }
 0x10c   :  { %1340 = vmatprep.subr.mxu1 %v1472_v12  ;;  %1327 = vmatmul.mubr.msk.f32.vlgmr.msra.gmra.mxu1 %vm167_vm4, %v1144_v28 }
 0x10d   :  { %1341 = vmatpush3.msk.msra.mxu1 %vm171_vm2, %v1558_v18  ;;  %1348 = vmatprep.mubr.msk.f32.mxu1 %vm1473_vm1, %v1472_v12 }
 0x10e   :  { %1342 = vmatprep.subr.mxu1 %v1472_v12 }
 0x10f   :  { %1343 = vmatpush3.msra.mxu1 %v1562_v19 }
 0x110   :  { %1344 = vmatprep.subr.mxu1 %v1472_v12 }
 0x111   :  { %1345 = vmatpush3.msra.mxu1 %v1552_v14 }
 0x112   :  { %1346 = vmatprep.subr.mxu1 %v1472_v12 }
 0x113   :  { %1347 = vmatpush3.msra.mxu1 %v1554_v15 }
 0x114   :  { %1349 = vmatmul.mubr.msk.f32.vlgmr.msra.gmra.mxu1 %vm167_vm4, %v1148_v58 }
 0x1ac   :  { %v241_v33 = vpop.f32.mrf.mxu1 }
 0x1ad   :  { %1381 = vtanh.f32 %v241_v33 }
 0x1ae   :  { %v1240_v34 = vpop.f32.mrf.mxu1 }
 0x1b4   :  { %v395_v35 = vpop.f32.mrf.mxu1 }
 0x1b6   :  { %v1262_v36 = vpop.f32.mrf.mxu1 }
 0x1ba   :  { %v1382_v37 = vpop.eup %1381 }
 0x1bb   :  { %1250 = vmatmul.mubr.msk.f32.vlgmr.msra.gmra.mxu0 %vm252_vm9, %v1382_v37 }
 0x1bc   :  { %1264 = vmatpush3.msra.mxu0 %v1643_v29  ;;  %1271 = vmatprep.mubr.msk.f32.mxu0 %vm1473_vm1, %v1472_v12  ;;  %v548_v38 = vpop.f32.mrf.mxu1 }
 0x1bd   :  { %1265 = vmatprep.subr.mxu0 %v1472_v12 }
 0x1be   :  { %1266 = vmatpush3.msra.mxu0 %v1648_v30  ;;  %v1284_v39 = vpop.f32.mrf.mxu1 }
 0x1bf   :  { %1267 = vmatprep.subr.mxu0 %v1472_v12 }
 0x1c0   :  { %1268 = vmatpush3.msra.mxu0 %v1655_v31 }
 0x1c1   :  { %1269 = vmatprep.subr.mxu0 %v1472_v12 }
 0x1c2   :  { %1270 = vmatpush3.msra.mxu0 %v1662_v32 }
 0x1c3   :  { %1285 = vmatprep.subr.mxu0 %v1472_v12 }
 0x1c4   :  { %v701_v44 = vpop.f32.mrf.mxu1 }
 0x1c6   :  { %v1306_v45 = vpop.f32.mrf.mxu1 }
 0x1cc   :  { %v854_v50 = vpop.f32.mrf.mxu1 }
 0x1ce   :  { %v1328_v52 = vpop.f32.mrf.mxu1 }
 0x1d4   :  { %v1007_v63 = vpop.f32.mrf.mxu1 }
 0x1d6   :  { %v1350_v0 = vpop.f32.mrf.mxu1 }
 0x27b   :  { %v322_v40 = vpop.f32.mrf.mxu0 }
 0x27c   :  { %v396_v41 = vadd.f32 %v395_v35, %v322_v40 }
 0x27d   :  { %v1251_v42 = vpop.f32.mrf.mxu0 }
 0x27e   :  { %1383 = vtanh.f32 %v396_v41 }
 0x28b   :  { %v1384_v43 = vpop.eup %1383 }
 0x28c   :  { %1272 = vmatmul.mubr.msk.f32.vlgmr.msra.gmra.mxu0 %vm252_vm9, %v1384_v43 }
 0x28d   :  { %1286 = vmatpush3.msra.mxu0 %v1643_v29  ;;  %1293 = vmatprep.mubr.msk.f32.mxu0 %vm1473_vm1, %v1472_v12 }
 0x28e   :  { %1287 = vmatprep.subr.mxu0 %v1472_v12 }
 0x28f   :  { %1288 = vmatpush3.msra.mxu0 %v1648_v30 }
 0x290   :  { %1289 = vmatprep.subr.mxu0 %v1472_v12 }
 0x291   :  { %1290 = vmatpush3.msra.mxu0 %v1655_v31 }
 0x292   :  { %1291 = vmatprep.subr.mxu0 %v1472_v12 }
 0x293   :  { %1292 = vmatpush3.msra.mxu0 %v1662_v32 }
 0x294   :  { %1307 = vmatprep.subr.mxu0 %v1472_v12 }
 0x34c   :  { %v475_v46 = vpop.f32.mrf.mxu0 }
 0x34d   :  { %v549_v47 = vadd.f32 %v548_v38, %v475_v46 }
 0x34e   :  { %v1273_v48 = vpop.f32.mrf.mxu0 }
 0x34f   :  { %1385 = vtanh.f32 %v549_v47 }
 0x35c   :  { %v1386_v49 = vpop.eup %1385 }
 0x35d   :  { %1294 = vmatmul.mubr.msk.f32.vlgmr.msra.gmra.mxu0 %vm252_vm9, %v1386_v49 }
 0x35e   :  { %1308 = vmatpush3.msra.mxu0 %v1643_v29  ;;  %1315 = vmatprep.mubr.msk.f32.mxu0 %vm1473_vm1, %v1472_v12 }
 0x35f   :  { %1309 = vmatprep.subr.mxu0 %v1472_v12 }
 0x360   :  { %1310 = vmatpush3.msra.mxu0 %v1648_v30 }
 0x361   :  { %1311 = vmatprep.subr.mxu0 %v1472_v12 }
 0x362   :  { %1312 = vmatpush3.msra.mxu0 %v1655_v31 }
 0x363   :  { %1313 = vmatprep.subr.mxu0 %v1472_v12 }
 0x364   :  { %1314 = vmatpush3.msra.mxu0 %v1662_v32 }
 0x365   :  { %1329 = vmatprep.subr.mxu0 %v1472_v12 }
 0x41d   :  { %v628_v53 = vpop.f32.mrf.mxu0 }
 0x41e   :  { %v702_v54 = vadd.f32 %v701_v44, %v628_v53 }
 0x41f   :  { %v1295_v55 = vpop.f32.mrf.mxu0 }
 0x420   :  { %1387 = vtanh.f32 %v702_v54 }
 0x42d   :  { %v1388_v56 = vpop.eup %1387 }
 0x42e   :  { %1316 = vmatmul.mubr.msk.f32.vlgmr.msra.gmra.mxu0 %vm252_vm9, %v1388_v56 }
 0x42f   :  { %1330 = vmatpush3.msra.mxu0 %v1643_v29  ;;  %1337 = vmatprep.mubr.msk.f32.mxu0 %vm1473_vm1, %v1472_v12 }
 0x430   :  { %1331 = vmatprep.subr.mxu0 %v1472_v12 }
 0x431   :  { %1332 = vmatpush3.msra.mxu0 %v1648_v30 }
 0x432   :  { %1333 = vmatprep.subr.mxu0 %v1472_v12 }
 0x433   :  { %1334 = vmatpush3.msra.mxu0 %v1655_v31 }
 0x434   :  { %1335 = vmatprep.subr.mxu0 %v1472_v12 }
 0x435   :  { %1336 = vmatpush3.msra.mxu0 %v1662_v32 }
 0x436   :  { %1351 = vmatprep.subr.mxu0 %v1472_v12 }
 0x4ee   :  { %v781_v59 = vpop.f32.mrf.mxu0 }
 0x4ef   :  { %v855_v60 = vadd.f32 %v854_v50, %v781_v59 }
 0x4f0   :  { %v1317_v61 = vpop.f32.mrf.mxu0 }
 0x4f1   :  { %1389 = vtanh.f32 %v855_v60 }
 0x4fe   :  { %v1390_v62 = vpop.eup %1389 }
 0x4ff   :  { %1338 = vmatmul.mubr.msk.f32.vlgmr.msra.gmra.mxu0 %vm252_vm9, %v1390_v62 }
 0x500   :  { %1359 = vmatprep.mubr.msk.f32.mxu0 %vm1473_vm1, %v1472_v12  ;;  %1352 = vmatpush3.msra.mxu0 %v1015_v1 }
 0x501   :  { %1353 = vmatprep.subr.mxu0 %v1472_v12 }
 0x502   :  { %1354 = vmatpush3.msra.mxu0 %v1014_v2 }
 0x503   :  { %1355 = vmatprep.subr.mxu0 %v1472_v12 }
 0x504   :  { %1356 = vmatpush3.msra.mxu0 %v1013_v3 }
 0x505   :  { %1357 = vmatprep.subr.mxu0 %v1472_v12 }
 0x506   :  { %1358 = vmatpush3.msra.mxu0 %v1012_v4 }
 0x5bf   :  { %v934_v5 = vpop.f32.mrf.mxu0 }
 0x5c0   :  { %v1008_v6 = vadd.f32 %v1007_v63, %v934_v5 }
 0x5c1   :  { %v1339_v7 = vpop.f32.mrf.mxu0 }
 0x5c2   :  { %1391 = vtanh.f32 %v1008_v6 }
 0x5cf   :  { %v1392_v8 = vpop.eup %1391 }
 0x5d0   :  { %1360 = vmatmul.mubr.msk.f32.vlgmr.msra.gmra.mxu0 %vm252_vm9, %v1392_v8 }
 0x690   :  { %v1092_v10 = vpop.f32.mrf.mxu0 }
 0x691   :  { %v1093_v11 = vadd.f32 %v1152_v9, %v1092_v10 }
 0x692   :  { %v1361_v13 = vpop.f32.mrf.mxu0 }
 0x693   :  { %1096 = vmax.xlane.f32.xlu1 %v1093_v11 }
 0x71c   :  { %v1097_v14 = vpop.xlane.xlu1 %1096 }
 0x71d   :  { %v1098_v15 = vsub.f32 %v1093_v11, %v1097_v14 }
 0x71f   :  { %v1099_v16 = vmul.f32 1.442695, %v1098_v15 }
 0x721   :  { %1393 = vpow2.f32 %v1099_v16 }
 0x72e   :  { %v1394_v12 = vpop.eup %1393 }
 0x72f   :  { %1101 = vadd.xlane.f32.xlu0 %v1394_v12 }
 0x7b8   :  { %v1102_v17 = vpop.xlane.xlu0 %1101 }
 0x7b9   :  { %1395 = vrcp.f32 %v1102_v17 }
 0x7c6   :  { %v1396_v18 = vpop.eup %1395 }
 0x7c7   :  { %v1104_v19 = vmul.f32 %v1396_v18, %v1102_v17 }
 0x7c9   :  { %v1105_v20 = vsub.f32 2.0, %v1104_v19 }
 0x7cb   :  { %v1106_v21 = vmul.f32 %v1396_v18, %v1105_v20 }
 0x7cd   :  { %v1107_v22 = vmul.f32 %v1394_v12, %v1106_v21 }
 0x7cf   :  { %1108 = vst [vmem:[#allocation7] sm:$0xff] %v1107_v22 }
 0x7d0   :  { %1448 = shalt.err (!%p1445_p0)
}
 0x7d1   :  { %1118 = dma.vmem_to_hbm [thread:$0]  %s1116_s27, 128, %s1735_s6, [#allocation4]  }
 0x7d2   :  { %1461 = dma.done.wait [#allocation4], 128  }
 0x7d3   :  { %1462 = vsyncadd [#allocation4], 4294967168 }
 0x7d4   :  { %1122 = vsyncpa [#allocation3], 1 }
 0x7d5   :  { %1123 = vsyncpa [#allocation6], 1 }
 0x7d6   :  { %1124 = vsyncpa [#allocation4], 1 }

</bundles_post_ra>
